<compile_context>
chip_gen: v7x
topology: tpu7x:2x2x1
jax: 0.10.0
libtpu: 0.0.40
codegen_flags: <defaults>
</compile_context>

<pallas_src>
import functools

import jax
import jax.numpy as jnp
from jax import lax
from jax.experimental import pallas as pl
from jax.experimental.pallas import tpu as pltpu


def _head_kernel(*refs, level_meta, num_levels):
    """Fused head over all FPN levels, one grid step total.

    refs layout:
      x_refs[l] : (C, B*(H+2)*(W+2) + 2*slack)  spatially-padded, flattened,
                                                batch-folded input, level l
      w1_ref    : (9, C, C)   conv1 weights, w1_ref[kh*3+kw] = W1[:, :, kh, kw]
      b1_ref    : (C, 1)      conv1 bias (broadcast along lanes)
      w2_ref    : (NC, C)     conv2 (1x1) weights
      b2_ref    : (NC, 1)     conv2 bias
      o_refs[l] : (NC, B*(H+2)*(W+2))  output at padded coords, level l
    """
    x_refs = refs[:num_levels]
    w1_ref, b1_ref, w2_ref, b2_ref = refs[num_levels:num_levels + 4]
    o_refs = refs[num_levels + 4:]

    w1_all = w1_ref[...]          # (9, C, C)
    b1 = b1_ref[...]              # (C, 1)
    w2 = w2_ref[...]              # (NC, C)
    b2 = b2_ref[...]              # (NC, 1)

    for l, (row_stride, slack, wout) in enumerate(level_meta):
        x_ref = x_refs[l]
        acc = None
        # 3x3 conv as 9 accumulated MXU matmuls on shifted windows.
        for kh in range(3):
            for kw in range(3):
                s = (kh - 1) * row_stride + (kw - 1)          # |s| <= slack
                window = x_ref[:, slack + s: slack + s + wout]  # (C, wout)
                term = jnp.dot(w1_all[kh * 3 + kw], window,
                               preferred_element_type=jnp.float32)
                acc = term if acc is None else acc + term
        hidden = jnp.maximum(acc + b1, 0.0)                   # bias + ReLU
        out = jnp.dot(w2, hidden, preferred_element_type=jnp.float32) + b2
        o_refs[l][...] = out.astype(o_refs[l].dtype)


def multiclass_head(features, w1, b1, w2, b2):
    """Forward over a list of feature maps.

    features: list of (B, C, H, W) float32
    w1: (C, C, 3, 3)   b1: (C,)      (PyTorch Conv2d layouts)
    w2: (NC, C, 1, 1)  b2: (NC,)
    returns: list of (B, NC, H, W)
    """
    B, C = features[0].shape[0], features[0].shape[1]
    NC = w2.shape[0]
    level_shapes = tuple((int(f.shape[2]), int(f.shape[3])) for f in features)

    xs = []
    level_meta = []
    for f, (H, W) in zip(features, level_shapes):
        row_stride = W + 2
        slack = W + 3                       # max tap shift = row_stride + 1
        wout = B * (H + 2) * row_stride
        xp = jnp.pad(f, ((0, 0), (0, 0), (1, 1), (1, 1)))       # (B,C,H+2,W+2)
        xp = jnp.transpose(xp, (1, 0, 2, 3)).reshape(C, wout)   # batch->lanes
        xp = jnp.pad(xp, ((0, 0), (slack, slack)))              # shift slack
        xs.append(xp)
        level_meta.append((row_stride, slack, wout))
    level_meta = tuple(level_meta)

    # conv1 weights (Cout, Cin, 3, 3) -> (9, Cout, Cin), tap-major.
    w1t = jnp.transpose(w1, (2, 3, 0, 1)).reshape(9, C, C)
    b1c = b1.reshape(C, 1)
    w2m = w2.reshape(NC, C)
    b2c = b2.reshape(NC, 1)

    kernel = functools.partial(_head_kernel, level_meta=level_meta,
                               num_levels=len(level_shapes))

    in_specs = (
        [pl.BlockSpec(x.shape, lambda i: (0, 0)) for x in xs]
        + [pl.BlockSpec((9, C, C), lambda i: (0, 0, 0)),
           pl.BlockSpec((C, 1), lambda i: (0, 0)),
           pl.BlockSpec((NC, C), lambda i: (0, 0)),
           pl.BlockSpec((NC, 1), lambda i: (0, 0))])
    out_specs = [pl.BlockSpec((NC, m[2]), lambda i: (0, 0)) for m in level_meta]
    out_shape = [jax.ShapeDtypeStruct((NC, m[2]), jnp.float32)
                 for m in level_meta]

    outs = pl.pallas_call(
        kernel,
        out_shape=out_shape,
        grid_spec=pltpu.PrefetchScalarGridSpec(
            num_scalar_prefetch=0,
            grid=(1,),
            in_specs=in_specs,
            out_specs=out_specs),
        compiler_params=pltpu.CompilerParams(
            dimension_semantics=("arbitrary",)),
    )(*xs, w1t, b1c, w2m, b2c)

    # (NC, B*(H+2)*(W+2)) -> interior crop -> (B, NC, H, W).
    results = []
    for o, (H, W) in zip(outs, level_shapes):
        o = o.reshape(NC, B, H + 2, W + 2)[:, :, 1:H + 1, 1:W + 1]
        results.append(jnp.transpose(o, (1, 0, 2, 3)))
    return results


def _reference_single(feature_nchw, w1, b1, w2, b2):
    """Pure-JAX reference using lax convolutions (matches PyTorch)."""
    y = lax.conv_general_dilated(
        feature_nchw, w1, window_strides=(1, 1), padding=((1, 1), (1, 1)),
        dimension_numbers=("NCHW", "OIHW", "NCHW"))
    y = y + b1.reshape(1, -1, 1, 1)
    y = jnp.maximum(y, 0.0)
    z = lax.conv_general_dilated(
        y, w2, window_strides=(1, 1), padding=((0, 0), (0, 0)),
        dimension_numbers=("NCHW", "OIHW", "NCHW"))
    return z + b2.reshape(1, -1, 1, 1)


if __name__ == "__main__":
    key = jax.random.PRNGKey(0)
    in_channels = 4
    num_classes = 3
    B = 2

    k1, k2, k3, k4, k5, k6 = jax.random.split(key, 6)

    # Deterministic parameter init (shapes follow nn.Conv2d in __init__).
    w1 = jax.random.normal(k1, (in_channels, in_channels, 3, 3), jnp.float32) * 0.1
    b1 = jax.random.normal(k2, (in_channels,), jnp.float32) * 0.1
    w2 = jax.random.normal(k3, (num_classes, in_channels, 1, 1), jnp.float32) * 0.1
    b2 = jax.random.normal(k4, (num_classes,), jnp.float32) * 0.1

    # Two FPN-style feature maps at different resolutions.
    feat0 = jax.random.normal(k5, (B, in_channels, 16, 16), jnp.float32)
    feat1 = jax.random.normal(k6, (B, in_channels, 8, 8), jnp.float32)
    features = [feat0, feat1]

    head = jax.jit(multiclass_head)
    outs = head(features, w1, b1, w2, b2)
    outs = [jax.block_until_ready(o) for o in outs]

    # Sanity check against pure-JAX reference.
    for f, o in zip(features, outs):
        ref = _reference_single(f, w1, b1, w2, b2)
        assert o.shape == ref.shape, (o.shape, ref.shape)
        err = float(jnp.max(jnp.abs(o - ref)))
        assert err < 1e-3, err

    print("KERNEL_OK")
</pallas_src>

<mosaic_0001>
module attributes {stable_mosaic.version = 11 : i64} {
  func.func @_head_kernel(%arg0: i32, %arg1: memref<4x686xf32, #tpu.memory_space<vmem>>, %arg2: memref<4x222xf32, #tpu.memory_space<vmem>>, %arg3: memref<9x4x4xf32, #tpu.memory_space<vmem>>, %arg4: memref<4x1xf32, #tpu.memory_space<vmem>>, %arg5: memref<3x4xf32, #tpu.memory_space<vmem>>, %arg6: memref<3x1xf32, #tpu.memory_space<vmem>>, %arg7: memref<3x648xf32, #tpu.memory_space<vmem>>, %arg8: memref<3x200xf32, #tpu.memory_space<vmem>>) attributes {dimension_semantics = [#tpu.dimension_semantics<arbitrary>], iteration_bounds = array<i64: 1>, scalar_prefetch = 0 : i64, scratch_operands = 0 : i64, tpu.core_type = #tpu.core_type<tc>, window_params = [{pipeline_mode = #tpu.pipeline_mode<synchronous>, transform_indices = @transform_0, window_bounds = array<i64: 4, 686>}, {pipeline_mode = #tpu.pipeline_mode<synchronous>, transform_indices = @transform_1, window_bounds = array<i64: 4, 222>}, {pipeline_mode = #tpu.pipeline_mode<synchronous>, transform_indices = @transform_2, window_bounds = array<i64: 9, 4, 4>}, {pipeline_mode = #tpu.pipeline_mode<synchronous>, transform_indices = @transform_3, window_bounds = array<i64: 4, 1>}, {pipeline_mode = #tpu.pipeline_mode<synchronous>, transform_indices = @transform_4, window_bounds = array<i64: 3, 4>}, {pipeline_mode = #tpu.pipeline_mode<synchronous>, transform_indices = @transform_5, window_bounds = array<i64: 3, 1>}, {pipeline_mode = #tpu.pipeline_mode<synchronous>, transform_indices = @transform_6, window_bounds = array<i64: 3, 648>}, {pipeline_mode = #tpu.pipeline_mode<synchronous>, transform_indices = @transform_7, window_bounds = array<i64: 3, 200>}]} {
    %c0 = arith.constant 0 : index
    %c0_0 = arith.constant 0 : index
    %c0_1 = arith.constant 0 : index
    %0 = vector.load %arg3[%c0, %c0_0, %c0_1] : memref<9x4x4xf32, #tpu.memory_space<vmem>>, vector<9x4x4xf32>
    %c0_2 = arith.constant 0 : index
    %c0_3 = arith.constant 0 : index
    %1 = vector.load %arg4[%c0_2, %c0_3] : memref<4x1xf32, #tpu.memory_space<vmem>>, vector<4x1xf32>
    %c0_4 = arith.constant 0 : index
    %c0_5 = arith.constant 0 : index
    %2 = vector.load %arg5[%c0_4, %c0_5] : memref<3x4xf32, #tpu.memory_space<vmem>>, vector<3x4xf32>
    %c0_6 = arith.constant 0 : index
    %c0_7 = arith.constant 0 : index
    %3 = vector.load %arg6[%c0_6, %c0_7] : memref<3x1xf32, #tpu.memory_space<vmem>>, vector<3x1xf32>
    %c0_8 = arith.constant 0 : index
    %c0_9 = arith.constant 0 : index
    %4 = vector.load %arg1[%c0_8, %c0_9] : memref<4x686xf32, #tpu.memory_space<vmem>>, vector<4x648xf32>
    %5 = vector.extract_strided_slice %0 {offsets = [0, 0, 0], sizes = [1, 4, 4], strides = [1, 1, 1]} : vector<9x4x4xf32> to vector<1x4x4xf32>
    %6 = vector.shape_cast %5 : vector<1x4x4xf32> to vector<4x4xf32>
    %cst = arith.constant dense<0.000000e+00> : vector<4x648xf32>
    %7 = tpu.matmul %6, %4, %cst {dimension_numbers = #tpu.dot_dimension_numbers<[1], [0], [0], [1], [0, 0, 1, 1], [], []>} : vector<4x4xf32>, vector<4x648xf32>, vector<4x648xf32> -> vector<4x648xf32>
    %c0_10 = arith.constant 0 : index
    %c1 = arith.constant 1 : index
    %8 = vector.load %arg1[%c0_10, %c1] : memref<4x686xf32, #tpu.memory_space<vmem>>, vector<4x648xf32>
    %9 = vector.extract_strided_slice %0 {offsets = [1, 0, 0], sizes = [1, 4, 4], strides = [1, 1, 1]} : vector<9x4x4xf32> to vector<1x4x4xf32>
    %10 = vector.shape_cast %9 : vector<1x4x4xf32> to vector<4x4xf32>
    %cst_11 = arith.constant dense<0.000000e+00> : vector<4x648xf32>
    %11 = tpu.matmul %10, %8, %cst_11 {dimension_numbers = #tpu.dot_dimension_numbers<[1], [0], [0], [1], [0, 0, 1, 1], [], []>} : vector<4x4xf32>, vector<4x648xf32>, vector<4x648xf32> -> vector<4x648xf32>
    %12 = arith.addf %7, %11 : vector<4x648xf32>
    %c0_12 = arith.constant 0 : index
    %c2 = arith.constant 2 : index
    %13 = vector.load %arg1[%c0_12, %c2] : memref<4x686xf32, #tpu.memory_space<vmem>>, vector<4x648xf32>
    %14 = vector.extract_strided_slice %0 {offsets = [2, 0, 0], sizes = [1, 4, 4], strides = [1, 1, 1]} : vector<9x4x4xf32> to vector<1x4x4xf32>
    %15 = vector.shape_cast %14 : vector<1x4x4xf32> to vector<4x4xf32>
    %cst_13 = arith.constant dense<0.000000e+00> : vector<4x648xf32>
    %16 = tpu.matmul %15, %13, %cst_13 {dimension_numbers = #tpu.dot_dimension_numbers<[1], [0], [0], [1], [0, 0, 1, 1], [], []>} : vector<4x4xf32>, vector<4x648xf32>, vector<4x648xf32> -> vector<4x648xf32>
    %17 = arith.addf %12, %16 : vector<4x648xf32>
    %c0_14 = arith.constant 0 : index
    %c18 = arith.constant 18 : index
    %18 = vector.load %arg1[%c0_14, %c18] : memref<4x686xf32, #tpu.memory_space<vmem>>, vector<4x648xf32>
    %19 = vector.extract_strided_slice %0 {offsets = [3, 0, 0], sizes = [1, 4, 4], strides = [1, 1, 1]} : vector<9x4x4xf32> to vector<1x4x4xf32>
    %20 = vector.shape_cast %19 : vector<1x4x4xf32> to vector<4x4xf32>
    %cst_15 = arith.constant dense<0.000000e+00> : vector<4x648xf32>
    %21 = tpu.matmul %20, %18, %cst_15 {dimension_numbers = #tpu.dot_dimension_numbers<[1], [0], [0], [1], [0, 0, 1, 1], [], []>} : vector<4x4xf32>, vector<4x648xf32>, vector<4x648xf32> -> vector<4x648xf32>
    %22 = arith.addf %17, %21 : vector<4x648xf32>
    %c0_16 = arith.constant 0 : index
    %c19 = arith.constant 19 : index
    %23 = vector.load %arg1[%c0_16, %c19] : memref<4x686xf32, #tpu.memory_space<vmem>>, vector<4x648xf32>
    %24 = vector.extract_strided_slice %0 {offsets = [4, 0, 0], sizes = [1, 4, 4], strides = [1, 1, 1]} : vector<9x4x4xf32> to vector<1x4x4xf32>
    %25 = vector.shape_cast %24 : vector<1x4x4xf32> to vector<4x4xf32>
    %cst_17 = arith.constant dense<0.000000e+00> : vector<4x648xf32>
    %26 = tpu.matmul %25, %23, %cst_17 {dimension_numbers = #tpu.dot_dimension_numbers<[1], [0], [0], [1], [0, 0, 1, 1], [], []>} : vector<4x4xf32>, vector<4x648xf32>, vector<4x648xf32> -> vector<4x648xf32>
    %27 = arith.addf %22, %26 : vector<4x648xf32>
    %c0_18 = arith.constant 0 : index
    %c20 = arith.constant 20 : index
    %28 = vector.load %arg1[%c0_18, %c20] : memref<4x686xf32, #tpu.memory_space<vmem>>, vector<4x648xf32>
    %29 = vector.extract_strided_slice %0 {offsets = [5, 0, 0], sizes = [1, 4, 4], strides = [1, 1, 1]} : vector<9x4x4xf32> to vector<1x4x4xf32>
    %30 = vector.shape_cast %29 : vector<1x4x4xf32> to vector<4x4xf32>
    %cst_19 = arith.constant dense<0.000000e+00> : vector<4x648xf32>
    %31 = tpu.matmul %30, %28, %cst_19 {dimension_numbers = #tpu.dot_dimension_numbers<[1], [0], [0], [1], [0, 0, 1, 1], [], []>} : vector<4x4xf32>, vector<4x648xf32>, vector<4x648xf32> -> vector<4x648xf32>
    %32 = arith.addf %27, %31 : vector<4x648xf32>
    %c0_20 = arith.constant 0 : index
    %c36 = arith.constant 36 : index
    %33 = vector.load %arg1[%c0_20, %c36] : memref<4x686xf32, #tpu.memory_space<vmem>>, vector<4x648xf32>
    %34 = vector.extract_strided_slice %0 {offsets = [6, 0, 0], sizes = [1, 4, 4], strides = [1, 1, 1]} : vector<9x4x4xf32> to vector<1x4x4xf32>
    %35 = vector.shape_cast %34 : vector<1x4x4xf32> to vector<4x4xf32>
    %cst_21 = arith.constant dense<0.000000e+00> : vector<4x648xf32>
    %36 = tpu.matmul %35, %33, %cst_21 {dimension_numbers = #tpu.dot_dimension_numbers<[1], [0], [0], [1], [0, 0, 1, 1], [], []>} : vector<4x4xf32>, vector<4x648xf32>, vector<4x648xf32> -> vector<4x648xf32>
    %37 = arith.addf %32, %36 : vector<4x648xf32>
    %c0_22 = arith.constant 0 : index
    %c37 = arith.constant 37 : index
    %38 = vector.load %arg1[%c0_22, %c37] : memref<4x686xf32, #tpu.memory_space<vmem>>, vector<4x648xf32>
    %39 = vector.extract_strided_slice %0 {offsets = [7, 0, 0], sizes = [1, 4, 4], strides = [1, 1, 1]} : vector<9x4x4xf32> to vector<1x4x4xf32>
    %40 = vector.shape_cast %39 : vector<1x4x4xf32> to vector<4x4xf32>
    %cst_23 = arith.constant dense<0.000000e+00> : vector<4x648xf32>
    %41 = tpu.matmul %40, %38, %cst_23 {dimension_numbers = #tpu.dot_dimension_numbers<[1], [0], [0], [1], [0, 0, 1, 1], [], []>} : vector<4x4xf32>, vector<4x648xf32>, vector<4x648xf32> -> vector<4x648xf32>
    %42 = arith.addf %37, %41 : vector<4x648xf32>
    %c0_24 = arith.constant 0 : index
    %c38 = arith.constant 38 : index
    %43 = vector.load %arg1[%c0_24, %c38] : memref<4x686xf32, #tpu.memory_space<vmem>>, vector<4x648xf32>
    %44 = vector.extract_strided_slice %0 {offsets = [8, 0, 0], sizes = [1, 4, 4], strides = [1, 1, 1]} : vector<9x4x4xf32> to vector<1x4x4xf32>
    %45 = vector.shape_cast %44 : vector<1x4x4xf32> to vector<4x4xf32>
    %cst_25 = arith.constant dense<0.000000e+00> : vector<4x648xf32>
    %46 = tpu.matmul %45, %43, %cst_25 {dimension_numbers = #tpu.dot_dimension_numbers<[1], [0], [0], [1], [0, 0, 1, 1], [], []>} : vector<4x4xf32>, vector<4x648xf32>, vector<4x648xf32> -> vector<4x648xf32>
    %47 = arith.addf %42, %46 : vector<4x648xf32>
    %48 = vector.broadcast %1 : vector<4x1xf32> to vector<4x648xf32>
    %49 = arith.addf %47, %48 : vector<4x648xf32>
    %cst_26 = arith.constant 0.000000e+00 : f32
    %50 = vector.broadcast %cst_26 : f32 to vector<4x648xf32>
    %51 = arith.maximumf %49, %50 : vector<4x648xf32>
    %cst_27 = arith.constant dense<0.000000e+00> : vector<3x648xf32>
    %52 = tpu.matmul %2, %51, %cst_27 {dimension_numbers = #tpu.dot_dimension_numbers<[1], [0], [0], [1], [0, 0, 1, 1], [], []>} : vector<3x4xf32>, vector<4x648xf32>, vector<3x648xf32> -> vector<3x648xf32>
    %53 = vector.broadcast %3 : vector<3x1xf32> to vector<3x648xf32>
    %54 = arith.addf %52, %53 : vector<3x648xf32>
    %c0_28 = arith.constant 0 : index
    %c0_29 = arith.constant 0 : index
    %55 = vector.load %arg7[%c0_28, %c0_29] : memref<3x648xf32, #tpu.memory_space<vmem>>, vector<3x648xf32>
    tpu.vector_store %arg7[%c0_28, %c0_29], %54 {strides = array<i32>} : memref<3x648xf32, #tpu.memory_space<vmem>>, vector<3x648xf32>,
    %c0_30 = arith.constant 0 : index
    %c0_31 = arith.constant 0 : index
    %56 = vector.load %arg2[%c0_30, %c0_31] : memref<4x222xf32, #tpu.memory_space<vmem>>, vector<4x200xf32>
    %57 = vector.extract_strided_slice %0 {offsets = [0, 0, 0], sizes = [1, 4, 4], strides = [1, 1, 1]} : vector<9x4x4xf32> to vector<1x4x4xf32>
    %58 = vector.shape_cast %57 : vector<1x4x4xf32> to vector<4x4xf32>
    %cst_32 = arith.constant dense<0.000000e+00> : vector<4x200xf32>
    %59 = tpu.matmul %58, %56, %cst_32 {dimension_numbers = #tpu.dot_dimension_numbers<[1], [0], [0], [1], [0, 0, 1, 1], [], []>} : vector<4x4xf32>, vector<4x200xf32>, vector<4x200xf32> -> vector<4x200xf32>
    %c0_33 = arith.constant 0 : index
    %c1_34 = arith.constant 1 : index
    %60 = vector.load %arg2[%c0_33, %c1_34] : memref<4x222xf32, #tpu.memory_space<vmem>>, vector<4x200xf32>
    %61 = vector.extract_strided_slice %0 {offsets = [1, 0, 0], sizes = [1, 4, 4], strides = [1, 1, 1]} : vector<9x4x4xf32> to vector<1x4x4xf32>
    %62 = vector.shape_cast %61 : vector<1x4x4xf32> to vector<4x4xf32>
    %cst_35 = arith.constant dense<0.000000e+00> : vector<4x200xf32>
    %63 = tpu.matmul %62, %60, %cst_35 {dimension_numbers = #tpu.dot_dimension_numbers<[1], [0], [0], [1], [0, 0, 1, 1], [], []>} : vector<4x4xf32>, vector<4x200xf32>, vector<4x200xf32> -> vector<4x200xf32>
    %64 = arith.addf %59, %63 : vector<4x200xf32>
    %c0_36 = arith.constant 0 : index
    %c2_37 = arith.constant 2 : index
    %65 = vector.load %arg2[%c0_36, %c2_37] : memref<4x222xf32, #tpu.memory_space<vmem>>, vector<4x200xf32>
    %66 = vector.extract_strided_slice %0 {offsets = [2, 0, 0], sizes = [1, 4, 4], strides = [1, 1, 1]} : vector<9x4x4xf32> to vector<1x4x4xf32>
    %67 = vector.shape_cast %66 : vector<1x4x4xf32> to vector<4x4xf32>
    %cst_38 = arith.constant dense<0.000000e+00> : vector<4x200xf32>
    %68 = tpu.matmul %67, %65, %cst_38 {dimension_numbers = #tpu.dot_dimension_numbers<[1], [0], [0], [1], [0, 0, 1, 1], [], []>} : vector<4x4xf32>, vector<4x200xf32>, vector<4x200xf32> -> vector<4x200xf32>
    %69 = arith.addf %64, %68 : vector<4x200xf32>
    %c0_39 = arith.constant 0 : index
    %c10 = arith.constant 10 : index
    %70 = vector.load %arg2[%c0_39, %c10] : memref<4x222xf32, #tpu.memory_space<vmem>>, vector<4x200xf32>
    %71 = vector.extract_strided_slice %0 {offsets = [3, 0, 0], sizes = [1, 4, 4], strides = [1, 1, 1]} : vector<9x4x4xf32> to vector<1x4x4xf32>
    %72 = vector.shape_cast %71 : vector<1x4x4xf32> to vector<4x4xf32>
    %cst_40 = arith.constant dense<0.000000e+00> : vector<4x200xf32>
    %73 = tpu.matmul %72, %70, %cst_40 {dimension_numbers = #tpu.dot_dimension_numbers<[1], [0], [0], [1], [0, 0, 1, 1], [], []>} : vector<4x4xf32>, vector<4x200xf32>, vector<4x200xf32> -> vector<4x200xf32>
    %74 = arith.addf %69, %73 : vector<4x200xf32>
    %c0_41 = arith.constant 0 : index
    %c11 = arith.constant 11 : index
    %75 = vector.load %arg2[%c0_41, %c11] : memref<4x222xf32, #tpu.memory_space<vmem>>, vector<4x200xf32>
    %76 = vector.extract_strided_slice %0 {offsets = [4, 0, 0], sizes = [1, 4, 4], strides = [1, 1, 1]} : vector<9x4x4xf32> to vector<1x4x4xf32>
    %77 = vector.shape_cast %76 : vector<1x4x4xf32> to vector<4x4xf32>
    %cst_42 = arith.constant dense<0.000000e+00> : vector<4x200xf32>
    %78 = tpu.matmul %77, %75, %cst_42 {dimension_numbers = #tpu.dot_dimension_numbers<[1], [0], [0], [1], [0, 0, 1, 1], [], []>} : vector<4x4xf32>, vector<4x200xf32>, vector<4x200xf32> -> vector<4x200xf32>
    %79 = arith.addf %74, %78 : vector<4x200xf32>
    %c0_43 = arith.constant 0 : index
    %c12 = arith.constant 12 : index
    %80 = vector.load %arg2[%c0_43, %c12] : memref<4x222xf32, #tpu.memory_space<vmem>>, vector<4x200xf32>
    %81 = vector.extract_strided_slice %0 {offsets = [5, 0, 0], sizes = [1, 4, 4], strides = [1, 1, 1]} : vector<9x4x4xf32> to vector<1x4x4xf32>
    %82 = vector.shape_cast %81 : vector<1x4x4xf32> to vector<4x4xf32>
    %cst_44 = arith.constant dense<0.000000e+00> : vector<4x200xf32>
    %83 = tpu.matmul %82, %80, %cst_44 {dimension_numbers = #tpu.dot_dimension_numbers<[1], [0], [0], [1], [0, 0, 1, 1], [], []>} : vector<4x4xf32>, vector<4x200xf32>, vector<4x200xf32> -> vector<4x200xf32>
    %84 = arith.addf %79, %83 : vector<4x200xf32>
    %c0_45 = arith.constant 0 : index
    %c20_46 = arith.constant 20 : index
    %85 = vector.load %arg2[%c0_45, %c20_46] : memref<4x222xf32, #tpu.memory_space<vmem>>, vector<4x200xf32>
    %86 = vector.extract_strided_slice %0 {offsets = [6, 0, 0], sizes = [1, 4, 4], strides = [1, 1, 1]} : vector<9x4x4xf32> to vector<1x4x4xf32>
    %87 = vector.shape_cast %86 : vector<1x4x4xf32> to vector<4x4xf32>
    %cst_47 = arith.constant dense<0.000000e+00> : vector<4x200xf32>
    %88 = tpu.matmul %87, %85, %cst_47 {dimension_numbers = #tpu.dot_dimension_numbers<[1], [0], [0], [1], [0, 0, 1, 1], [], []>} : vector<4x4xf32>, vector<4x200xf32>, vector<4x200xf32> -> vector<4x200xf32>
    %89 = arith.addf %84, %88 : vector<4x200xf32>
    %c0_48 = arith.constant 0 : index
    %c21 = arith.constant 21 : index
    %90 = vector.load %arg2[%c0_48, %c21] : memref<4x222xf32, #tpu.memory_space<vmem>>, vector<4x200xf32>
    %91 = vector.extract_strided_slice %0 {offsets = [7, 0, 0], sizes = [1, 4, 4], strides = [1, 1, 1]} : vector<9x4x4xf32> to vector<1x4x4xf32>
    %92 = vector.shape_cast %91 : vector<1x4x4xf32> to vector<4x4xf32>
    %cst_49 = arith.constant dense<0.000000e+00> : vector<4x200xf32>
    %93 = tpu.matmul %92, %90, %cst_49 {dimension_numbers = #tpu.dot_dimension_numbers<[1], [0], [0], [1], [0, 0, 1, 1], [], []>} : vector<4x4xf32>, vector<4x200xf32>, vector<4x200xf32> -> vector<4x200xf32>
    %94 = arith.addf %89, %93 : vector<4x200xf32>
    %c0_50 = arith.constant 0 : index
    %c22 = arith.constant 22 : index
    %95 = vector.load %arg2[%c0_50, %c22] : memref<4x222xf32, #tpu.memory_space<vmem>>, vector<4x200xf32>
    %96 = vector.extract_strided_slice %0 {offsets = [8, 0, 0], sizes = [1, 4, 4], strides = [1, 1, 1]} : vector<9x4x4xf32> to vector<1x4x4xf32>
    %97 = vector.shape_cast %96 : vector<1x4x4xf32> to vector<4x4xf32>
    %cst_51 = arith.constant dense<0.000000e+00> : vector<4x200xf32>
    %98 = tpu.matmul %97, %95, %cst_51 {dimension_numbers = #tpu.dot_dimension_numbers<[1], [0], [0], [1], [0, 0, 1, 1], [], []>} : vector<4x4xf32>, vector<4x200xf32>, vector<4x200xf32> -> vector<4x200xf32>
    %99 = arith.addf %94, %98 : vector<4x200xf32>
    %100 = vector.broadcast %1 : vector<4x1xf32> to vector<4x200xf32>
    %101 = arith.addf %99, %100 : vector<4x200xf32>
    %cst_52 = arith.constant 0.000000e+00 : f32
    %102 = vector.broadcast %cst_52 : f32 to vector<4x200xf32>
    %103 = arith.maximumf %101, %102 : vector<4x200xf32>
    %cst_53 = arith.constant dense<0.000000e+00> : vector<3x200xf32>
    %104 = tpu.matmul %2, %103, %cst_53 {dimension_numbers = #tpu.dot_dimension_numbers<[1], [0], [0], [1], [0, 0, 1, 1], [], []>} : vector<3x4xf32>, vector<4x200xf32>, vector<3x200xf32> -> vector<3x200xf32>
    %105 = vector.broadcast %3 : vector<3x1xf32> to vector<3x200xf32>
    %106 = arith.addf %104, %105 : vector<3x200xf32>
    %c0_54 = arith.constant 0 : index
    %c0_55 = arith.constant 0 : index
    %107 = vector.load %arg8[%c0_54, %c0_55] : memref<3x200xf32, #tpu.memory_space<vmem>>, vector<3x200xf32>
    tpu.vector_store %arg8[%c0_54, %c0_55], %106 {strides = array<i32>} : memref<3x200xf32, #tpu.memory_space<vmem>>, vector<3x200xf32>,
    return
  }
  func.func @transform_0(%arg0: i32) -> (i32, i32) {
    %c0_i32 = arith.constant 0 : i32
    %c0_i32_0 = arith.constant 0 : i32
    %c0_i32_1 = arith.constant 0 : i32
    return %c0_i32, %c0_i32_0 : i32, i32
  }
  func.func @transform_1(%arg0: i32) -> (i32, i32) {
    %c0_i32 = arith.constant 0 : i32
    %c0_i32_0 = arith.constant 0 : i32
    %c0_i32_1 = arith.constant 0 : i32
    return %c0_i32, %c0_i32_0 : i32, i32
  }
  func.func @transform_2(%arg0: i32) -> (i32, i32, i32) {
    %c0_i32 = arith.constant 0 : i32
    %c0_i32_0 = arith.constant 0 : i32
    %c0_i32_1 = arith.constant 0 : i32
    %c0_i32_2 = arith.constant 0 : i32
    return %c0_i32, %c0_i32_0, %c0_i32_1 : i32, i32, i32
  }
  func.func @transform_3(%arg0: i32) -> (i32, i32) {
    %c0_i32 = arith.constant 0 : i32
    %c0_i32_0 = arith.constant 0 : i32
    %c0_i32_1 = arith.constant 0 : i32
    return %c0_i32, %c0_i32_0 : i32, i32
  }
  func.func @transform_4(%arg0: i32) -> (i32, i32) {
    %c0_i32 = arith.constant 0 : i32
    %c0_i32_0 = arith.constant 0 : i32
    %c0_i32_1 = arith.constant 0 : i32
    return %c0_i32, %c0_i32_0 : i32, i32
  }
  func.func @transform_5(%arg0: i32) -> (i32, i32) {
    %c0_i32 = arith.constant 0 : i32
    %c0_i32_0 = arith.constant 0 : i32
    %c0_i32_1 = arith.constant 0 : i32
    return %c0_i32, %c0_i32_0 : i32, i32
  }
  func.func @transform_6(%arg0: i32) -> (i32, i32) {
    %c0_i32 = arith.constant 0 : i32
    %c0_i32_0 = arith.constant 0 : i32
    %c0_i32_1 = arith.constant 0 : i32
    return %c0_i32, %c0_i32_0 : i32, i32
  }
  func.func @transform_7(%arg0: i32) -> (i32, i32) {
    %c0_i32 = arith.constant 0 : i32
    %c0_i32_0 = arith.constant 0 : i32
    %c0_i32_1 = arith.constant 0 : i32
    return %c0_i32, %c0_i32_0 : i32, i32
  }
}

</mosaic_0001>

<bundles_post_ra>
// kernel: multiclass_head.1
= control target key start
LH: loop header
LB: loop body
LE: loop exit
PB: predicated region body
PF: predicated region fallthrough
CT: control target
= control target key end

     0   :  { %v3681_v2 = vmov 0.0   ;;  %s3682_s28 = smov 127   ;;  %vm68_vm0 = vcmask 1043456   ;;  %vm64_vm1 = vcmask 31744   ;;  %s3684_s10 = smov 110   ;;  %v3689_v8 = vmov 0   ;;  %s4180_s0 = inlined_call_operand.vmem [shape: f32[4,686], index: 0, kind: input, shape index: {}]   ;;  %s4181_s2 = inlined_call_operand.vmem [shape: f32[9,4,4], index: 2, kind: input, shape index: {}]   ;;  %s4182_s3 = inlined_call_operand.vmem [shape: f32[4,1], index: 3, kind: input, shape index: {}]   ;;  %s4183_s1 = inlined_call_operand.vmem [shape: f32[4,222], index: 1, kind: input, shape index: {}]   ;;  %s4184_s5 = inlined_call_operand.vmem [shape: f32[3,1], index: 5, kind: input, shape index: {}]   ;;  %s4185_s4 = inlined_call_operand.vmem [shape: f32[3,4], index: 4, kind: input, shape index: {}]   ;;  %s4186_s6 = inlined_call_operand.vmem [shape: f32[3,648], index: 6, kind: output, shape index: {0}]   ;;  %s4187_s7 = inlined_call_operand.vmem [shape: f32[3,200], index: 7, kind: output, shape index: {1}]  }
   0x1   :  { %v3739_v0 = vld [vmem:[%s4180_s0 + $0x8] sm:$0xff]  ;;  %v3744_v1 = vld [vmem:[%s4180_s0] sm:$0xff]  ;;  %145 = vmatprep.mubr.f32.mxu0 %v3681_v2  ;;  %444 = vmatprep.mubr.f32.mxu1 %v3681_v2  ;;  %v3761_v5 = vld [vmem:[%s4180_s0 + $0x10] sm:$0xff]  ;;  %s3683_s0 = smov 126   ;;  %s3685_s11 = smov 109   ;;  %vm58_vm2 = vcmask 1039360  }
   0x2   :  { %50 = vrot.lane.b32.xlu0 %v3739_v0, %s3682_s28  ;;  %46 = vrot.lane.b32.xlu1 %v3744_v1, %s3682_s28  ;;  %v44_v3 = vcombine.high %v3739_v0, %v3739_v0  ;;  %v3756_v4 = vcombine.high %v3744_v1, %v3744_v1  ;;  %v3771_v6 = vcombine.high %v3761_v5, %v3761_v5  ;;  %v3776_v7 = vld [vmem:[%s4181_s2] sm:$0xf]  ;;  %s3686_s12 = smov 108   ;;  %s3687_s13 = smov 92   ;;  %v3865_v18 = vld [vmem:[%s4181_s2 + $0x4] sm:$0xf] }
   0x3   :  { %s3688_s14 = smov 91   ;;  %3676 = vset.pattern.permute.xlu0 %v3689_v8  ;;  %s3690_s15 = smov 90   ;;  %v34_v9 = vld [vmem:[%s4182_s3] sm:$0xf]  ;;  %vm543_vm3 = vcmask 1031168   ;;  %vm804_vm4 = vcmask 900096  }
   0x4   :  { %3489 = vmatprep.subr.msk.mxu1 %vm68_vm0, %v44_v3  ;;  %v3838_v10 = vld [vmem:[%s4183_s1] sm:$0xff]  ;;  %s3691_s3 = smov 118   ;;  %s3692_s1 = smov 117   ;;  %v3914_v34 = vld [vmem:[%s4181_s2 + $0x8] sm:$0xf]  ;;  %vm1065_vm5 = vcmask 891904  }
   0x5   :  { %3490 = vmatpush1.msk.msra.mxu1 %vm68_vm0, %v3739_v0  ;;  %v3842_v11 = vcombine.high %v3838_v10, %v3838_v10  ;;  %s3693_s20 = smov 116   ;;  %s3694_s23 = smov 107   ;;  %v36_v23 = vld [vmem:[%s4184_s5] sm:$0x7]  ;;  %v3941_v46 = vld [vmem:[%s4181_s2 + $0xc] sm:$0xf] }
   0x6   :  { %52 = vrot.lane.b32.xlu1 %v44_v3, %s3682_s28  ;;  %48 = vrot.lane.b32.xlu0 %v3756_v4, %s3682_s28  ;;  %s3695_s24 = smov 106   ;;  %v3964_v55 = vld [vmem:[%s4181_s2 + $0x10] sm:$0xf]  ;;  %vm1326_vm6 = vcmask 883712   ;;  %vm1587_vm7 = vcmask 752640   ;;  %vm1848_vm8 = vcmask 744448  }
   0x7   :  { %3491 = vmatmul.mubr.msk.f32.vlgmr.msra.gmra.mrb[0].mxu1 %vm64_vm1, %v3776_v7  ;;  %vm2109_vm9 = vcmask 736256   ;;  %vm2873_vm10 = vcmask 965632   ;;  %vm2959_vm11 = vcmask 957440   ;;  %vm3045_vm12 = vcmask 949248  }
   0x8   :  { %699 = vmatprep.mubr.f32.mxu1 %v3681_v2  ;;  %vm3216_vm13 = vcmask 875520   ;;  %vm3302_vm14 = vcmask 867328   ;;  %vm2619_vm15 = vcmask 1042432  }
   0xa   :  { %56 = vrot.lane.b32.xlu1 %v3771_v6, %s3682_s28  ;;  %54 = vrot.lane.b32.xlu0 %v3761_v5, %s3682_s28 }
   0xe   :  { %535 = vrot.lane.b32.xlu1 %v3739_v0, %s3683_s0  ;;  %533 = vrot.lane.b32.xlu0 %v3756_v4, %s3683_s0 }
  0x12   :  { %537 = vrot.lane.b32.xlu1 %v44_v3, %s3683_s0  ;;  %531 = vrot.lane.b32.xlu0 %v3744_v1, %s3683_s0 }
  0x16   :  { %541 = vrot.lane.b32.xlu1 %v3771_v6, %s3683_s0  ;;  %539 = vrot.lane.b32.xlu0 %v3761_v5, %s3683_s0 }
  0x1a   :  { %796 = vrot.lane.b32.xlu1 %v3739_v0, %s3684_s10  ;;  %794 = vrot.lane.b32.xlu0 %v3756_v4, %s3684_s10 }
  0x1e   :  { %798 = vrot.lane.b32.xlu1 %v44_v3, %s3684_s10  ;;  %792 = vrot.lane.b32.xlu0 %v3744_v1, %s3684_s10 }
  0x22   :  { %802 = vrot.lane.b32.xlu1 %v3771_v6, %s3684_s10  ;;  %800 = vrot.lane.b32.xlu0 %v3761_v5, %s3684_s10 }
  0x26   :  { %1057 = vrot.lane.b32.xlu1 %v3739_v0, %s3685_s11  ;;  %1055 = vrot.lane.b32.xlu0 %v3756_v4, %s3685_s11 }
  0x2a   :  { %1059 = vrot.lane.b32.xlu1 %v44_v3, %s3685_s11  ;;  %1053 = vrot.lane.b32.xlu0 %v3744_v1, %s3685_s11 }
  0x2e   :  { %1063 = vrot.lane.b32.xlu1 %v3771_v6, %s3685_s11  ;;  %1061 = vrot.lane.b32.xlu0 %v3761_v5, %s3685_s11 }
  0x32   :  { %1318 = vrot.lane.b32.xlu1 %v3739_v0, %s3686_s12  ;;  %1316 = vrot.lane.b32.xlu0 %v3756_v4, %s3686_s12 }
  0x36   :  { %1320 = vrot.lane.b32.xlu1 %v44_v3, %s3686_s12  ;;  %1314 = vrot.lane.b32.xlu0 %v3744_v1, %s3686_s12 }
  0x3a   :  { %1324 = vrot.lane.b32.xlu1 %v3771_v6, %s3686_s12  ;;  %1322 = vrot.lane.b32.xlu0 %v3761_v5, %s3686_s12 }
  0x3e   :  { %1579 = vrot.lane.b32.xlu1 %v3739_v0, %s3687_s13  ;;  %1577 = vrot.lane.b32.xlu0 %v3756_v4, %s3687_s13 }
  0x42   :  { %1581 = vrot.lane.b32.xlu1 %v44_v3, %s3687_s13  ;;  %1575 = vrot.lane.b32.xlu0 %v3744_v1, %s3687_s13 }
  0x46   :  { %1585 = vrot.lane.b32.xlu1 %v3771_v6, %s3687_s13  ;;  %1583 = vrot.lane.b32.xlu0 %v3761_v5, %s3687_s13 }
  0x4a   :  { %1840 = vrot.lane.b32.xlu1 %v3739_v0, %s3688_s14  ;;  %1838 = vrot.lane.b32.xlu0 %v3756_v4, %s3688_s14 }
  0x4e   :  { %1842 = vrot.lane.b32.xlu1 %v44_v3, %s3688_s14  ;;  %1836 = vrot.lane.b32.xlu0 %v3744_v1, %s3688_s14 }
  0x52   :  { %1846 = vrot.lane.b32.xlu1 %v3771_v6, %s3688_s14  ;;  %1844 = vrot.lane.b32.xlu0 %v3761_v5, %s3688_s14 }
  0x56   :  { %2101 = vrot.lane.b32.xlu1 %v3739_v0, %s3690_s15  ;;  %2099 = vrot.lane.b32.xlu0 %v3756_v4, %s3690_s15 }
  0x5a   :  { %2103 = vrot.lane.b32.xlu1 %v44_v3, %s3690_s15  ;;  %2097 = vrot.lane.b32.xlu0 %v3744_v1, %s3690_s15  ;;  %v3988_v3 = vld [vmem:[%s4181_s2 + $0x14] sm:$0xf] }
  0x5e   :  { %2107 = vrot.lane.b32.xlu1 %v3771_v6, %s3690_s15  ;;  %2105 = vrot.lane.b32.xlu0 %v3761_v5, %s3690_s15 }
  0x62   :  { %2351 = vperm.xlu0 %3676, %v34_v9   ;;  %2626 = vrot.lane.b32.xlu1 %v3838_v10, %s3682_s28 }
  0x66   :  { %2784 = vrot.lane.b32.xlu0 %v3838_v10, %s3683_s0  ;;  %2628 = vrot.lane.b32.xlu1 %v3842_v11, %s3682_s28 }
  0x6a   :  { %2869 = vrot.lane.b32.xlu0 %v3838_v10, %s3691_s3  ;;  %2786 = vrot.lane.b32.xlu1 %v3842_v11, %s3683_s0 }
  0x6e   :  { %2955 = vrot.lane.b32.xlu0 %v3838_v10, %s3692_s1  ;;  %2871 = vrot.lane.b32.xlu1 %v3842_v11, %s3691_s3 }
  0x72   :  { %3041 = vrot.lane.b32.xlu0 %v3838_v10, %s3693_s20  ;;  %2957 = vrot.lane.b32.xlu1 %v3842_v11, %s3692_s1 }
  0x74   :  { %v51_v12 = vpop.permute.xlu0 %50  ;;  %v47_v13 = vpop.permute.xlu1 %46 }
  0x76   :  { %3127 = vrot.lane.b32.xlu0 %v3838_v10, %s3686_s12  ;;  %3043 = vrot.lane.b32.xlu1 %v3842_v11, %s3693_s20 }
  0x78   :  { %v53_v14 = vpop.permute.xlu1 %52  ;;  %v49_v15 = vpop.permute.xlu0 %48 }
  0x79   :  { %v60_v16 = vsel %vm58_vm2, %v49_v15, %v51_v12  ;;  %v59_v17 = vsel %vm58_vm2, %v47_v13, %v49_v15  ;;  %v61_v22 = vsel %vm58_vm2, %v51_v12, %v53_v14 }
  0x7a   :  { %3477 = vmatprep.subr.msk.mxu0 %vm68_vm0, %v60_v16  ;;  %3212 = vrot.lane.b32.xlu0 %v3838_v10, %s3694_s23 }
  0x7b   :  { %3478 = vmatpush1.msk.msra.mxu0 %vm68_vm0, %v59_v17  ;;  %3129 = vrot.lane.b32.xlu1 %v3842_v11, %s3686_s12 }
  0x7c   :  { %v57_v19 = vpop.permute.xlu1 %56  ;;  %3479 = vmatmul.mubr.msk.f32.vlgmr.msra.gmra.mrb[0].mxu0 %vm64_vm1, %v3865_v18  ;;  %v55_v20 = vpop.permute.xlu0 %54 }
  0x7d   :  { %v62_v21 = vsel %vm58_vm2, %v53_v14, %v55_v20  ;;  %216 = vmatprep.mubr.f32.mxu0 %v3681_v2  ;;  %v63_v24 = vsel %vm58_vm2, %v55_v20, %v57_v19 }
  0x7e   :  { %3480 = vmatprep.subr.msk.mxu0 %vm68_vm0, %v62_v21  ;;  %3298 = vrot.lane.b32.xlu0 %v3838_v10, %s3695_s24 }
  0x7f   :  { %3481 = vmatpush1.msk.msra.mxu0 %vm68_vm0, %v61_v22  ;;  %3214 = vrot.lane.b32.xlu1 %v3842_v11, %s3694_s23 }
  0x80   :  { %v536_v25 = vpop.permute.xlu1 %535  ;;  %3482 = vmatmul.mubr.msk.f32.vlgmr.msra.gmra.mrb[2].mxu0 %vm64_vm1, %v3865_v18  ;;  %3483 = vmatprep.subr.msk.mxu0 %vm68_vm0, %v57_v19  ;;  %v534_v26 = vpop.permute.xlu0 %533  ;;  %v4013_v19 = vld [vmem:[%s4181_s2 + $0x18] sm:$0xf] }
  0x81   :  { %3484 = vmatpush1.msk.msra.mxu0 %vm68_vm0, %v63_v24  ;;  %287 = vmatprep.mubr.f32.mxu0 %v3681_v2  ;;  %v545_v31 = vsel %vm543_vm3, %v534_v26, %v536_v25 }
  0x82   :  { %3486 = vmatprep.subr.msk.mxu0 %vm68_vm0, %v3756_v4  ;;  %2368 = vperm.xlu0 %3676, %v36_v23  }
  0x83   :  { %3300 = vrot.lane.b32.xlu1 %v3842_v11, %s3695_s24 }
  0x84   :  { %v538_v27 = vpop.permute.xlu1 %537  ;;  %3485 = vmatmul.mubr.msk.f32.vlgmr.msra.gmra.mrb[4].mxu0 %vm64_vm1, %v3865_v18  ;;  %v532_v28 = vpop.permute.xlu0 %531 }
  0x85   :  { %3487 = vmatpush1.msk.msra.mxu0 %vm68_vm0, %v3744_v1  ;;  %373 = vmatprep.mubr.f32.mxu0 %v3681_v2  ;;  %v546_v33 = vsel %vm543_vm3, %v536_v25, %v538_v27  ;;  %v544_v35 = vsel %vm543_vm3, %v532_v28, %v534_v26 }
  0x86   :  { %3492 = vmatprep.subr.msk.mxu0 %vm68_vm0, %v3771_v6 }
  0x88   :  { %v542_v29 = vpop.permute.xlu1 %541  ;;  %3488 = vmatmul.mubr.msk.f32.vlgmr.msra.gmra.mrb[0].mxu0 %vm64_vm1, %v3776_v7  ;;  %v540_v30 = vpop.permute.xlu0 %539 }
  0x89   :  { %3493 = vmatpush1.msk.msra.mxu0 %vm68_vm0, %v3761_v5  ;;  %v547_v32 = vsel %vm543_vm3, %v538_v27, %v540_v30  ;;  %515 = vmatprep.mubr.f32.mxu0 %v3681_v2  ;;  %v548_v38 = vsel %vm543_vm3, %v540_v30, %v542_v29 }
  0x8a   :  { %3495 = vmatprep.subr.msk.mxu0 %vm68_vm0, %v545_v31  ;;  %3498 = vmatprep.subr.msk.mxu1 %vm68_vm0, %v547_v32  ;;  %v4038_v31 = vld [vmem:[%s4181_s2 + $0x1c] sm:$0xf] }
  0x8b   :  { %3499 = vmatpush1.msk.msra.mxu1 %vm68_vm0, %v546_v33 }
  0x8c   :  { %v797_v36 = vpop.permute.xlu1 %796  ;;  %3494 = vmatmul.mubr.msk.f32.vlgmr.msra.gmra.mrb[4].mxu0 %vm64_vm1, %v3776_v7  ;;  %v795_v37 = vpop.permute.xlu0 %794  ;;  %3500 = vmatmul.mubr.msk.f32.vlgmr.msra.gmra.mrb[0].mxu1 %vm64_vm1, %v3914_v34 }
  0x8d   :  { %3496 = vmatpush1.msk.msra.mxu0 %vm68_vm0, %v544_v35  ;;  %628 = vmatprep.mubr.f32.mxu0 %v3681_v2  ;;  %v806_v41 = vsel %vm804_vm4, %v795_v37, %v797_v36 }
  0x8e   :  { %3501 = vmatprep.subr.msk.mxu0 %vm68_vm0, %v542_v29  ;;  %960 = vmatprep.mubr.f32.mxu1 %v3681_v2 }
  0x90   :  { %v799_v39 = vpop.permute.xlu1 %798  ;;  %3497 = vmatmul.mubr.msk.f32.vlgmr.msra.gmra.mrb[0].mxu0 %vm64_vm1, %v3914_v34  ;;  %v793_v40 = vpop.permute.xlu0 %792 }
  0x91   :  { %3502 = vmatpush1.msk.msra.mxu0 %vm68_vm0, %v548_v38  ;;  %770 = vmatprep.mubr.f32.mxu0 %v3681_v2  ;;  %v805_v42 = vsel %vm804_vm4, %v793_v40, %v795_v37  ;;  %v807_v47 = vsel %vm804_vm4, %v797_v36, %v799_v39 }
  0x92   :  { %3504 = vmatprep.subr.msk.mxu0 %vm68_vm0, %v806_v41 }
  0x94   :  { %v803_v43 = vpop.permute.xlu1 %802  ;;  %3503 = vmatmul.mubr.msk.f32.vlgmr.msra.gmra.mrb[4].mxu0 %vm64_vm1, %v3914_v34  ;;  %v801_v44 = vpop.permute.xlu0 %800 }
  0x95   :  { %3505 = vmatpush1.msk.msra.mxu0 %vm68_vm0, %v805_v42  ;;  %v808_v45 = vsel %vm804_vm4, %v799_v39, %v801_v44  ;;  %889 = vmatprep.mubr.f32.mxu0 %v3681_v2  ;;  %v809_v48 = vsel %vm804_vm4, %v801_v44, %v803_v43  ;;  %v4063_v44 = vld [vmem:[%s4181_s2 + $0x20] sm:$0xf]  ;;  %vm3466_vm4 = vcmask 587780  }
  0x96   :  { %3507 = vmatprep.subr.msk.mxu1 %vm68_vm0, %v808_v45  ;;  %3510 = vmatprep.subr.msk.mxu0 %vm68_vm0, %v803_v43 }
  0x97   :  { %3508 = vmatpush1.msk.msra.mxu1 %vm68_vm0, %v807_v47 }
  0x98   :  { %v1058_v49 = vpop.permute.xlu1 %1057  ;;  %3506 = vmatmul.mubr.msk.f32.vlgmr.msra.gmra.mrb[0].mxu0 %vm64_vm1, %v3941_v46  ;;  %v1056_v50 = vpop.permute.xlu0 %1055  ;;  %3509 = vmatmul.mubr.msk.f32.vlgmr.msra.gmra.mrb[0].mxu1 %vm64_vm1, %v3941_v46 }
  0x99   :  { %3511 = vmatpush1.msk.msra.mxu0 %vm68_vm0, %v809_v48  ;;  %v1067_v51 = vsel %vm1065_vm5, %v1056_v50, %v1058_v49  ;;  %1031 = vmatprep.mubr.f32.mxu0 %v3681_v2 }
  0x9a   :  { %3513 = vmatprep.subr.msk.mxu0 %vm68_vm0, %v1067_v51  ;;  %1221 = vmatprep.mubr.f32.mxu1 %v3681_v2 }
  0x9c   :  { %v1060_v52 = vpop.permute.xlu1 %1059  ;;  %v1054_v53 = vpop.permute.xlu0 %1053  ;;  %3512 = vmatmul.mubr.msk.f32.vlgmr.msra.gmra.mrb[4].mxu0 %vm64_vm1, %v3941_v46 }
  0x9d   :  { %v1066_v54 = vsel %vm1065_vm5, %v1054_v53, %v1056_v50  ;;  %1150 = vmatprep.mubr.f32.mxu0 %v3681_v2  ;;  %v1068_v60 = vsel %vm1065_vm5, %v1058_v49, %v1060_v52 }
  0x9e   :  { %3514 = vmatpush1.msk.msra.mxu0 %vm68_vm0, %v1066_v54 }
  0xa0   :  { %v1064_v56 = vpop.permute.xlu1 %1063  ;;  %v1062_v57 = vpop.permute.xlu0 %1061  ;;  %3515 = vmatmul.mubr.msk.f32.vlgmr.msra.gmra.mrb[0].mxu0 %vm64_vm1, %v3964_v55 }
  0xa1   :  { %v1069_v58 = vsel %vm1065_vm5, %v1060_v52, %v1062_v57  ;;  %v1070_v59 = vsel %vm1065_vm5, %v1062_v57, %v1064_v56  ;;  %3519 = vmatprep.subr.msk.mxu0 %vm68_vm0, %v1064_v56  ;;  %1292 = vmatprep.mubr.f32.mxu0 %v3681_v2  ;;  %vm3467_vm5 = vmor %vm3466_vm4, %vm2619_vm15 }
  0xa2   :  { %3516 = vmatprep.subr.msk.mxu1 %vm68_vm0, %v1069_v58  ;;  %3520 = vmatpush1.msk.msra.mxu0 %vm68_vm0, %v1070_v59 }
  0xa3   :  { %3517 = vmatpush1.msk.msra.mxu1 %vm68_vm0, %v1068_v60 }
  0xa4   :  { %v1319_v61 = vpop.permute.xlu1 %1318  ;;  %v1317_v62 = vpop.permute.xlu0 %1316  ;;  %3521 = vmatmul.mubr.msk.f32.vlgmr.msra.gmra.mrb[4].mxu0 %vm64_vm1, %v3964_v55  ;;  %3518 = vmatmul.mubr.msk.f32.vlgmr.msra.gmra.mrb[0].mxu1 %vm64_vm1, %v3964_v55 }
  0xa5   :  { %v1328_v63 = vsel %vm1326_vm6, %v1317_v62, %v1319_v61  ;;  %1411 = vmatprep.mubr.f32.mxu0 %v3681_v2  ;;  %1482 = vmatprep.mubr.f32.mxu1 %v3681_v2 }
  0xa6   :  { %3522 = vmatprep.subr.msk.mxu0 %vm68_vm0, %v1328_v63 }
  0xa8   :  { %v1321_v0 = vpop.permute.xlu1 %1320  ;;  %v1315_v1 = vpop.permute.xlu0 %1314 }
  0xa9   :  { %v1327_v4 = vsel %vm1326_vm6, %v1315_v1, %v1317_v62  ;;  %v1329_v12 = vsel %vm1326_vm6, %v1319_v61, %v1321_v0  ;;  %v4090_v1 = vld [vmem:[%s4185_s4] sm:$0x7] }
  0xaa   :  { %3523 = vmatpush1.msk.msra.mxu0 %vm68_vm0, %v1327_v4 }
  0xab   :  { %3524 = vmatmul.mubr.msk.f32.vlgmr.msra.gmra.mrb[0].mxu0 %vm64_vm1, %v3988_v3 }
  0xac   :  { %v1325_v5 = vpop.permute.xlu1 %1324  ;;  %v1323_v6 = vpop.permute.xlu0 %1322  ;;  %1553 = vmatprep.mubr.f32.mxu0 %v3681_v2 }
  0xad   :  { %v1330_v8 = vsel %vm1326_vm6, %v1321_v0, %v1323_v6  ;;  %v1331_v9 = vsel %vm1326_vm6, %v1323_v6, %v1325_v5  ;;  %3528 = vmatprep.subr.msk.mxu0 %vm68_vm0, %v1325_v5 }
  0xae   :  { %3525 = vmatprep.subr.msk.mxu1 %vm68_vm0, %v1330_v8  ;;  %3529 = vmatpush1.msk.msra.mxu0 %vm68_vm0, %v1331_v9 }
  0xaf   :  { %3526 = vmatpush1.msk.msra.mxu1 %vm68_vm0, %v1329_v12  ;;  %3530 = vmatmul.mubr.msk.f32.vlgmr.msra.gmra.mrb[4].mxu0 %vm64_vm1, %v3988_v3 }
  0xb0   :  { %v1580_v13 = vpop.permute.xlu1 %1579  ;;  %v1578_v14 = vpop.permute.xlu0 %1577  ;;  %1672 = vmatprep.mubr.f32.mxu0 %v3681_v2  ;;  %3527 = vmatmul.mubr.msk.f32.vlgmr.msra.gmra.mrb[0].mxu1 %vm64_vm1, %v3988_v3 }
  0xb1   :  { %v1589_v15 = vsel %vm1587_vm7, %v1578_v14, %v1580_v13  ;;  %1743 = vmatprep.mubr.f32.mxu1 %v3681_v2 }
  0xb2   :  { %3531 = vmatprep.subr.msk.mxu0 %vm68_vm0, %v1589_v15 }
  0xb4   :  { %v1582_v16 = vpop.permute.xlu1 %1581  ;;  %v1576_v17 = vpop.permute.xlu0 %1575 }
  0xb5   :  { %v1588_v20 = vsel %vm1587_vm7, %v1576_v17, %v1578_v14  ;;  %v1590_v25 = vsel %vm1587_vm7, %v1580_v13, %v1582_v16 }
  0xb6   :  { %3532 = vmatpush1.msk.msra.mxu0 %vm68_vm0, %v1588_v20 }
  0xb7   :  { %3533 = vmatmul.mubr.msk.f32.vlgmr.msra.gmra.mrb[0].mxu0 %vm64_vm1, %v4013_v19 }
  0xb8   :  { %v1586_v21 = vpop.permute.xlu1 %1585  ;;  %v1584_v22 = vpop.permute.xlu0 %1583  ;;  %1814 = vmatprep.mubr.f32.mxu0 %v3681_v2 }
  0xb9   :  { %v1591_v23 = vsel %vm1587_vm7, %v1582_v16, %v1584_v22  ;;  %v1592_v24 = vsel %vm1587_vm7, %v1584_v22, %v1586_v21  ;;  %3537 = vmatprep.subr.msk.mxu0 %vm68_vm0, %v1586_v21 }
  0xba   :  { %3534 = vmatprep.subr.msk.mxu1 %vm68_vm0, %v1591_v23  ;;  %3538 = vmatpush1.msk.msra.mxu0 %vm68_vm0, %v1592_v24 }
  0xbb   :  { %3535 = vmatpush1.msk.msra.mxu1 %vm68_vm0, %v1590_v25  ;;  %3539 = vmatmul.mubr.msk.f32.vlgmr.msra.gmra.mrb[4].mxu0 %vm64_vm1, %v4013_v19 }
  0xbc   :  { %v1841_v26 = vpop.permute.xlu1 %1840  ;;  %v1839_v27 = vpop.permute.xlu0 %1838  ;;  %3536 = vmatmul.mubr.msk.f32.vlgmr.msra.gmra.mrb[0].mxu1 %vm64_vm1, %v4013_v19  ;;  %1933 = vmatprep.mubr.f32.mxu0 %v3681_v2 }
  0xbd   :  { %v1850_v28 = vsel %vm1848_vm8, %v1839_v27, %v1841_v26  ;;  %2004 = vmatprep.mubr.f32.mxu1 %v3681_v2 }
  0xbe   :  { %3540 = vmatprep.subr.msk.mxu0 %vm68_vm0, %v1850_v28 }
  0xc0   :  { %v1843_v29 = vpop.permute.xlu1 %1842  ;;  %v1837_v30 = vpop.permute.xlu0 %1836 }
  0xc1   :  { %v1849_v32 = vsel %vm1848_vm8, %v1837_v30, %v1839_v27  ;;  %v1851_v38 = vsel %vm1848_vm8, %v1841_v26, %v1843_v29 }
  0xc2   :  { %3541 = vmatpush1.msk.msra.mxu0 %vm68_vm0, %v1849_v32 }
  0xc3   :  { %3542 = vmatmul.mubr.msk.f32.vlgmr.msra.gmra.mrb[0].mxu0 %vm64_vm1, %v4038_v31 }
  0xc4   :  { %v1847_v33 = vpop.permute.xlu1 %1846  ;;  %v1845_v35 = vpop.permute.xlu0 %1844  ;;  %2075 = vmatprep.mubr.f32.mxu0 %v3681_v2 }
  0xc5   :  { %v1852_v36 = vsel %vm1848_vm8, %v1843_v29, %v1845_v35  ;;  %v1853_v37 = vsel %vm1848_vm8, %v1845_v35, %v1847_v33  ;;  %3546 = vmatprep.subr.msk.mxu0 %vm68_vm0, %v1847_v33 }
  0xc6   :  { %3543 = vmatprep.subr.msk.mxu1 %vm68_vm0, %v1852_v36  ;;  %3547 = vmatpush1.msk.msra.mxu0 %vm68_vm0, %v1853_v37 }
  0xc7   :  { %3544 = vmatpush1.msk.msra.mxu1 %vm68_vm0, %v1851_v38  ;;  %3548 = vmatmul.mubr.msk.f32.vlgmr.msra.gmra.mrb[4].mxu0 %vm64_vm1, %v4038_v31 }
  0xc8   :  { %v2102_v39 = vpop.permute.xlu1 %2101  ;;  %v2100_v40 = vpop.permute.xlu0 %2099  ;;  %3545 = vmatmul.mubr.msk.f32.vlgmr.msra.gmra.mrb[0].mxu1 %vm64_vm1, %v4038_v31  ;;  %2194 = vmatprep.mubr.f32.mxu0 %v3681_v2 }
  0xc9   :  { %v2111_v41 = vsel %vm2109_vm9, %v2100_v40, %v2102_v39  ;;  %2265 = vmatprep.mubr.f32.mxu1 %v3681_v2 }
  0xca   :  { %3549 = vmatprep.subr.msk.mxu0 %vm68_vm0, %v2111_v41 }
  0xcc   :  { %v2104_v42 = vpop.permute.xlu1 %2103  ;;  %v2098_v43 = vpop.permute.xlu0 %2097 }
  0xcd   :  { %v2110_v45 = vsel %vm2109_vm9, %v2098_v43, %v2100_v40  ;;  %v2112_v51 = vsel %vm2109_vm9, %v2102_v39, %v2104_v42 }
  0xce   :  { %3550 = vmatpush1.msk.msra.mxu0 %vm68_vm0, %v2110_v45 }
  0xcf   :  { %3551 = vmatmul.mubr.msk.f32.vlgmr.msra.gmra.mrb[0].mxu0 %vm64_vm1, %v4063_v44 }
  0xd0   :  { %v2108_v47 = vpop.permute.xlu1 %2107  ;;  %v2106_v48 = vpop.permute.xlu0 %2105  ;;  %2336 = vmatprep.mubr.f32.mxu0 %v3681_v2 }
  0xd1   :  { %v2113_v49 = vsel %vm2109_vm9, %v2104_v42, %v2106_v48  ;;  %v2114_v50 = vsel %vm2109_vm9, %v2106_v48, %v2108_v47  ;;  %3555 = vmatprep.subr.msk.mxu0 %vm68_vm0, %v2108_v47 }
  0xd2   :  { %3552 = vmatprep.subr.msk.mxu1 %vm68_vm0, %v2113_v49  ;;  %3556 = vmatpush1.msk.msra.mxu0 %vm68_vm0, %v2114_v50 }
  0xd3   :  { %3553 = vmatpush1.msk.msra.mxu1 %vm68_vm0, %v2112_v51  ;;  %3557 = vmatmul.mubr.msk.f32.vlgmr.msra.gmra.mrb[4].mxu0 %vm64_vm1, %v4063_v44 }
  0xd4   :  { %3554 = vmatmul.mubr.msk.f32.vlgmr.msra.gmra.mrb[0].mxu1 %vm64_vm1, %v4063_v44  ;;  %3455 = vmatprep.mubr.f32.mxu0 %v3681_v2  ;;  %v2627_v9 = vpop.permute.xlu1 %2626 }
  0xd5   :  { %2456 = vmatprep.mubr.f32.mxu1 %v3681_v2 }
  0xd8   :  { %v2629_v21 = vpop.permute.xlu1 %2628 }
  0xd9   :  { %v2630_v22 = vsel %vm58_vm2, %v2627_v9, %v2629_v21  ;;  %vm2620_vm2 = vcmask 63492  }
  0xdc   :  { %v2787_v23 = vpop.permute.xlu1 %2786 }
  0xe0   :  { %v2872_v26 = vpop.permute.xlu1 %2871 }
  0xe1   :  { %v4083_v54 = vpop.permute.xlu0 %2351 }
  0xe5   :  { %v2785_v24 = vpop.permute.xlu0 %2784 }
  0xe6   :  { %v2788_v25 = vsel %vm543_vm3, %v2785_v24, %v2787_v23  ;;  %vm2621_vm3 = vmor %vm2620_vm2, %vm2619_vm15 }
 0x153   :  { %v218_v52 = vpop.f32.mrb[2].mxu0 }
 0x154   :  { %v220_v53 = vpop.f32.mrb[3].mxu0 }
 0x1a2   :  { %v2196_v56 = vpop.f32.mrb[0].mxu0 }
 0x1a3   :  { %v2354_v57 = vadd.f32 %v4083_v54, %v2196_v56  ;;  %v2198_v58 = vpop.f32.mrb[1].mxu0 }
 0x1a4   :  { %v2355_v59 = vadd.f32 %v4083_v54, %v2198_v58 }
 0x1a5   :  { %v2360_v62 = vmax.f32 %v2354_v57, 0.0 }
 0x1a6   :  { %v2361_v60 = vmax.f32 %v2355_v59, 0.0  ;;  %v2338_v61 = vpop.f32.mrb[4].mxu0 }
 0x1a7   :  { %v2267_v63 = vpop.f32.mrb[0].mxu1  ;;  %v2340_v0 = vpop.f32.mrb[5].mxu0  ;;  %v2358_v14 = vadd.f32 %v4083_v54, %v2338_v61 }
 0x1a8   :  { %v3597_v4 = vadd.f32 %v2267_v63, %v218_v52  ;;  %v2269_v5 = vpop.f32.mrb[1].mxu1  ;;  %3558 = vmatprep.subr.msk.mxu1 %vm68_vm0, %v2361_v60  ;;  %v2359_v12 = vadd.f32 %v4083_v54, %v2340_v0 }
 0x1a9   :  { %v3598_v6 = vadd.f32 %v2269_v5, %v220_v53  ;;  %3559 = vmatpush1.msk.msra.mxu1 %vm68_vm0, %v2360_v62  ;;  %v2364_v20 = vmax.f32 %v2358_v14, 0.0 }
 0x1aa   :  { %v2356_v8 = vadd.f32 %v3597_v4, %v4083_v54  ;;  %3560 = vmatmul.mubr.msk.f32.vlgmr.msra.gmra.mrb[2].mxu1 %vm64_vm1, %v4090_v1  ;;  %v2365_v17 = vmax.f32 %v2359_v12, 0.0 }
 0x1ab   :  { %v2357_v13 = vadd.f32 %v3598_v6, %v4083_v54  ;;  %2527 = vmatprep.mubr.f32.mxu1 %v3681_v2 }
 0x1ac   :  { %v2362_v16 = vmax.f32 %v2356_v8, 0.0 }
 0x1ad   :  { %v2363_v15 = vmax.f32 %v2357_v13, 0.0 }
 0x1af   :  { %3561 = vmatprep.subr.msk.mxu1 %vm68_vm0, %v2363_v15 }
 0x1b0   :  { %3562 = vmatpush1.msk.msra.mxu1 %vm68_vm0, %v2362_v16 }
 0x1b1   :  { %3563 = vmatmul.mubr.msk.f32.vlgmr.msra.gmra.mrb[4].mxu1 %vm64_vm1, %v4090_v1  ;;  %3564 = vmatprep.subr.msk.mxu1 %vm68_vm0, %v2365_v17 }
 0x1b2   :  { %3565 = vmatpush1.msk.msra.mxu1 %vm68_vm0, %v2364_v20  ;;  %2598 = vmatprep.mubr.f32.mxu1 %v3681_v2 }
 0x1b3   :  { %3567 = vmatprep.subr.msk.mxu1 %vm68_vm0, %v2629_v21 }
 0x1b5   :  { %3566 = vmatmul.mubr.msk.f32.vlgmr.msra.gmra.mrb[6].mxu1 %vm64_vm1, %v4090_v1 }
 0x1b6   :  { %3568 = vmatpush1.msk.msra.mxu1 %vm68_vm0, %v2630_v22  ;;  %2699 = vmatprep.mubr.f32.mxu1 %v3681_v2 }
 0x1b7   :  { %3570 = vmatprep.subr.msk.mxu1 %vm68_vm0, %v3842_v11  ;;  %v2870_v11 = vpop.permute.xlu0 %2869 }
 0x1b9   :  { %3569 = vmatmul.mubr.msk.f32.vlgmr.msra.gmra.mrb[8].mxu1 %vm64_vm1, %v3865_v18  ;;  %v2958_v18 = vpop.permute.xlu1 %2957 }
 0x1ba   :  { %3571 = vmatpush1.msk.msra.mxu1 %vm68_vm0, %v3838_v10  ;;  %2774 = vmatprep.mubr.f32.mxu1 %v3681_v2  ;;  %v2874_v10 = vsel %vm2873_vm10, %v2870_v11, %v2872_v26 }
 0x1bb   :  { %3573 = vmatprep.subr.msk.mxu1 %vm68_vm0, %v2787_v23 }
 0x1bd   :  { %v3044_v28 = vpop.permute.xlu1 %3043 }
 0x1c1   :  { %3572 = vmatmul.mubr.msk.f32.vlgmr.msra.gmra.mrb[8].mxu1 %vm64_vm1, %v3776_v7  ;;  %v2956_v7 = vpop.permute.xlu0 %2955  ;;  %v3130_v30 = vpop.permute.xlu1 %3129 }
 0x1c2   :  { %3574 = vmatpush1.msk.msra.mxu1 %vm68_vm0, %v2788_v25  ;;  %2857 = vmatprep.mubr.f32.mxu1 %v3681_v2  ;;  %v2960_v27 = vsel %vm2959_vm11, %v2956_v7, %v2958_v18 }
 0x1c3   :  { %3576 = vmatprep.subr.msk.mxu1 %vm68_vm0, %v2872_v26 }
 0x1c5   :  { %v3215_v33 = vpop.permute.xlu1 %3214 }
 0x1c9   :  { %3575 = vmatmul.mubr.msk.f32.vlgmr.msra.gmra.mrb[8].mxu1 %vm64_vm1, %v3914_v34  ;;  %v3042_v34 = vpop.permute.xlu0 %3041  ;;  %v3301_v36 = vpop.permute.xlu1 %3300 }
 0x1ca   :  { %3577 = vmatpush1.msk.msra.mxu1 %vm68_vm0, %v2874_v10  ;;  %2943 = vmatprep.mubr.f32.mxu1 %v3681_v2  ;;  %v3046_v29 = vsel %vm3045_vm12, %v3042_v34, %v3044_v28 }
 0x1cb   :  { %3579 = vmatprep.subr.msk.mxu1 %vm68_vm0, %v2958_v18 }
 0x1d1   :  { %3578 = vmatmul.mubr.msk.f32.vlgmr.msra.gmra.mrb[8].mxu1 %vm64_vm1, %v3941_v46  ;;  %v3128_v46 = vpop.permute.xlu0 %3127 }
 0x1d2   :  { %3580 = vmatpush1.msk.msra.mxu1 %vm68_vm0, %v2960_v27  ;;  %3029 = vmatprep.mubr.f32.mxu1 %v3681_v2  ;;  %v3131_v32 = vsel %vm1326_vm6, %v3128_v46, %v3130_v30 }
 0x1d3   :  { %3582 = vmatprep.subr.msk.mxu1 %vm68_vm0, %v3044_v28 }
 0x1d9   :  { %3581 = vmatmul.mubr.msk.f32.vlgmr.msra.gmra.mrb[8].mxu1 %vm64_vm1, %v3964_v55  ;;  %v3213_v55 = vpop.permute.xlu0 %3212 }
 0x1da   :  { %3583 = vmatpush1.msk.msra.mxu1 %vm68_vm0, %v3046_v29  ;;  %3115 = vmatprep.mubr.f32.mxu1 %v3681_v2  ;;  %v3217_v35 = vsel %vm3216_vm13, %v3213_v55, %v3215_v33 }
 0x1db   :  { %3585 = vmatprep.subr.msk.mxu1 %vm68_vm0, %v3130_v30 }
 0x1e1   :  { %3584 = vmatmul.mubr.msk.f32.vlgmr.msra.gmra.mrb[8].mxu1 %vm64_vm1, %v3988_v3  ;;  %v3299_v3 = vpop.permute.xlu0 %3298 }
 0x1e2   :  { %3586 = vmatpush1.msk.msra.mxu1 %vm68_vm0, %v3131_v32  ;;  %3200 = vmatprep.mubr.f32.mxu1 %v3681_v2  ;;  %v3303_v37 = vsel %vm3302_vm14, %v3299_v3, %v3301_v36 }
 0x1e3   :  { %3588 = vmatprep.subr.msk.mxu1 %vm68_vm0, %v3215_v33 }
 0x1e9   :  { %3587 = vmatmul.mubr.msk.f32.vlgmr.msra.gmra.mrb[8].mxu1 %vm64_vm1, %v4013_v19  ;;  %v2369_v19 = vpop.permute.xlu0 %2368 }
 0x1ea   :  { %3589 = vmatpush1.msk.msra.mxu1 %vm68_vm0, %v3217_v35  ;;  %3286 = vmatprep.mubr.f32.mxu1 %v3681_v2 }
 0x1eb   :  { %3591 = vmatprep.subr.msk.mxu1 %vm68_vm0, %v3301_v36 }
 0x1f1   :  { %3590 = vmatmul.mubr.msk.f32.vlgmr.msra.gmra.mrb[8].mxu1 %vm64_vm1, %v4038_v31 }
 0x1f2   :  { %3592 = vmatpush1.msk.msra.mxu1 %vm68_vm0, %v3303_v37  ;;  %3372 = vmatprep.mubr.f32.mxu1 %v3681_v2 }
 0x1f9   :  { %3593 = vmatmul.mubr.msk.f32.vlgmr.msra.gmra.mrb[8].mxu1 %vm64_vm1, %v4063_v44 }
 0x27d   :  { %v2458_v38 = vpop.f32.mrb[2].mxu1 }
 0x27e   :  { %v2459_v39 = vadd.f32 %v2458_v38, %v2369_v19  ;;  %v2460_v40 = vpop.f32.mrb[3].mxu1 }
 0x27f   :  { %v2461_v41 = vadd.f32 %v2460_v40, %v2369_v19 }
 0x281   :  { %v2611_v42 = vcombine.low %v2459_v39, %v2461_v41 }
 0x283   :  { %2617 = vst [vmem:[%s4186_s6] sm:$0x77] %v2611_v42 }
 0x284   :  { %v2529_v43 = vpop.f32.mrb[4].mxu1 }
 0x285   :  { %v2530_v45 = vadd.f32 %v2529_v43, %v2369_v19  ;;  %v2531_v31 = vpop.f32.mrb[5].mxu1 }
 0x286   :  { %v2532_v47 = vadd.f32 %v2531_v31, %v2369_v19 }
 0x288   :  { %v2612_v48 = vcombine.low %v2530_v45, %v2532_v47  ;;  %v2600_v49 = vpop.f32.mrb[6].mxu1 }
 0x289   :  { %v2601_v2 = vadd.f32 %v2600_v49, %v2369_v19  ;;  %v2602_v44 = vpop.f32.mrb[7].mxu1 }
 0x28a   :  { %2618 = vst [vmem:[%s4186_s6 + $0x8] sm:$0x77] %v2612_v48  ;;  %v2603_v50 = vadd.f32 %v2602_v44, %v2369_v19 }
 0x28c   :  { %v2613_v51 = vcombine.low %v2601_v2, %v2603_v50 }
 0x28e   :  { %2622 = vst.msk [vmem:[%s4186_s6 + $0x10] sm:$0x77] %vm2621_vm3, %v2613_v51 }
 0x2cc   :  { %v3374_v52 = vpop.f32.mrb[8].mxu1 }
 0x2cd   :  { %v3381_v53 = vadd.f32 %v3374_v52, %v4083_v54  ;;  %v3376_v56 = vpop.f32.mrb[9].mxu1 }
 0x2ce   :  { %v3382_v57 = vadd.f32 %v3376_v56, %v4083_v54 }
 0x2cf   :  { %v3383_v59 = vmax.f32 %v3381_v53, 0.0 }
 0x2d0   :  { %v3384_v58 = vmax.f32 %v3382_v57, 0.0 }
 0x2d2   :  { %3594 = vmatprep.subr.msk.mxu0 %vm68_vm0, %v3384_v58 }
 0x2d3   :  { %3595 = vmatpush1.msk.msra.mxu0 %vm68_vm0, %v3383_v59 }
 0x2d4   :  { %3596 = vmatmul.mubr.msk.f32.vlgmr.msra.gmra.mrb[6].mxu0 %vm64_vm1, %v4090_v1 }
 0x3a7   :  { %v3457_v60 = vpop.f32.mrb[6].mxu0 }
 0x3a8   :  { %v3458_v61 = vadd.f32 %v3457_v60, %v2369_v19  ;;  %v3459_v62 = vpop.f32.mrb[7].mxu0 }
 0x3a9   :  { %v3460_v63 = vadd.f32 %v3459_v62, %v2369_v19 }
 0x3ab   :  { %v3464_v0 = vcombine.low %v3458_v61, %v3460_v63 }
 0x3ad   :  { %3468 = vst.msk [vmem:[%s4187_s7] sm:$0x77] %vm3467_vm5, %v3464_v0 }

</bundles_post_ra>
